<compile_context>
chip_gen: v7x
topology: tpu7x:2x2x1
jax: 0.10.0
libtpu: 0.0.40
codegen_flags: <defaults>
</compile_context>

<pallas_src>
import functools

import jax
import jax.numpy as jnp
from jax.experimental import pallas as pl
from jax.experimental.pallas import tpu as pltpu

_LANE = 128
_SUBLANE = 8


def _round_up(x, m):
    return ((x + m - 1) // m) * m


def _cdiv(a, b):
    return (a + b - 1) // b


def _pick_grid(n):
    """(tm, grid_steps): 1 step for small N, even step count (v7x) for large N."""
    if n <= 512:
        g = 1
    else:
        g = 2 * _cdiv(n, 2 * 1024)          # even number of steps, <= ~1024 rows each
    tm = _round_up(_cdiv(n, g), _SUBLANE)
    return tm, g


# --------------------------------------------------------------------------
# Kernels
# --------------------------------------------------------------------------
def _mlp_head_kernel(x_ref, w1_ref, w2_ref, b2_ref, q_ref):
    """q = relu(x @ W1) @ W2 + b2 for one row tile (b1 folded into W1 row D)."""
    h = jnp.dot(x_ref[...], w1_ref[...], preferred_element_type=jnp.float32)
    h = jnp.maximum(h, 0.0).astype(w2_ref.dtype)
    q = jnp.dot(h, w2_ref[...], preferred_element_type=jnp.float32) + b2_ref[...]
    q_ref[...] = q.astype(q_ref.dtype)


def _dueling_head_kernel(x_ref, w1_ref, w2_ref, b2_ref, q_ref, *,
                         num_actions, adv_cols):
    """Fused dueling head.

    Column layout of the second-stage output qv (width adv_cols + 128):
      [0, adv_cols)           : advantage (first num_actions real, rest exactly 0)
      [adv_cols, adv_cols+128): value     (column adv_cols real, rest exactly 0)
    """
    h = jnp.dot(x_ref[...], w1_ref[...], preferred_element_type=jnp.float32)
    h = jnp.maximum(h, 0.0).astype(w2_ref.dtype)                       # (tm, 2H)
    qv = jnp.dot(h, w2_ref[...], preferred_element_type=jnp.float32) + b2_ref[...]
    adv = qv[:, :adv_cols]                           # lane-aligned slice
    valb = qv[:, adv_cols:]                          # lane-aligned slice
    val = jnp.sum(valb, axis=-1, keepdims=True)      # only one nonzero column
    mean_adv = jnp.sum(adv, axis=-1, keepdims=True) * (1.0 / num_actions)
    q = val + adv - mean_adv                         # cols >= num_actions are garbage
    q_ref[...] = q.astype(q_ref.dtype)


# --------------------------------------------------------------------------
# Host-side parameter packing (done once)
# --------------------------------------------------------------------------
def pack_params(params, dueling, compute_dtype=jnp.bfloat16):
    """Fuse branches, fold b1 into W1, pad to lane-dense shapes, cast to bf16."""
    if dueling:
        wa1, ba1 = params["wa1"], params["ba1"]
        wa2, adv_bias = params["wa2"], params["adv_bias"]
        wv1, bv1 = params["wv1"], params["bv1"]
        wv2, bv2 = params["wv2"], params["bv2"]
        D, H = wa1.shape
        A = wa2.shape[1]
        Dp = _round_up(D + 1, _LANE)                     # +1 row for the folded bias
        Ap = _round_up(A, _LANE)                         # advantage column block
        K2 = Ap + _LANE                                  # + value column block

        w1 = jnp.concatenate([wa1, wv1], axis=1)                          # (D, 2H)
        b1 = jnp.concatenate([ba1.reshape(1, H), bv1.reshape(1, H)], 1)   # (1, 2H)
        w1 = jnp.concatenate(
            [w1, b1, jnp.zeros((Dp - D - 1, 2 * H), w1.dtype)], axis=0
        ).astype(compute_dtype)                                           # (Dp, 2H)

        w2 = jnp.zeros((2 * H, K2), jnp.float32)
        w2 = w2.at[:H, :A].set(wa2)                       # advantage block
        w2 = w2.at[H:, Ap].set(wv2[:, 0])                 # value column
        w2 = w2.astype(compute_dtype)                                     # (2H, K2)

        b2 = jnp.zeros((1, K2), jnp.float32)
        b2 = b2.at[0, :A].set(jnp.broadcast_to(
            adv_bias.reshape(1, 1).astype(jnp.float32), (1, A))[0])
        b2 = b2.at[0, Ap].set(bv2.reshape(()).astype(jnp.float32))

        return {"w1": w1, "w2": w2, "b2": b2,
                "in_features": D, "num_actions": A,
                "adv_cols": Ap, "out_cols": Ap}
    else:
        w1, b1 = params["w1"], params["b1"]
        w2, b2 = params["w2"], params["b2"]
        D, H = w1.shape
        A = w2.shape[1]
        Dp = _round_up(D + 1, _LANE)
        Ap = _round_up(A, _LANE)

        w1p = jnp.concatenate(
            [w1, b1.reshape(1, H), jnp.zeros((Dp - D - 1, H), w1.dtype)], axis=0
        ).astype(compute_dtype)                                           # (Dp, H)
        w2p = jnp.pad(w2, ((0, 0), (0, Ap - A))).astype(compute_dtype)    # (H, Ap)
        b2p = jnp.pad(b2.reshape(1, A).astype(jnp.float32),
                      ((0, 0), (0, Ap - A)))                              # (1, Ap)
        return {"w1": w1p, "w2": w2p, "b2": b2p,
                "in_features": D, "num_actions": A,
                "adv_cols": Ap, "out_cols": Ap}


# --------------------------------------------------------------------------
# Pallas wrappers
# --------------------------------------------------------------------------
def _run_head(kernel_fn, x, w1, w2, b2, out_cols, *, tm=None, grid_steps=None):
    N, Dp = x.shape
    K1 = w1.shape[1]          # hidden width of first stage (H or 2H)
    K2 = w2.shape[1]          # padded width of second stage

    if tm is None or grid_steps is None:
        tm, grid_steps = _pick_grid(N)
    Np = tm * grid_steps
    if Np != N:
        x = jnp.pad(x, ((0, Np - N), (0, 0)))

    flops = 2 * Np * Dp * K1 + 2 * Np * K1 * K2
    bytes_accessed = (Np * Dp * x.dtype.itemsize
                      + w1.size * w1.dtype.itemsize
                      + w2.size * w2.dtype.itemsize
                      + b2.size * 4
                      + Np * out_cols * 4)

    q = pl.pallas_call(
        kernel_fn,
        out_shape=jax.ShapeDtypeStruct((Np, out_cols), jnp.float32),
        grid_spec=pltpu.PrefetchScalarGridSpec(
            num_scalar_prefetch=0,
            grid=(grid_steps,),
            in_specs=[
                pl.BlockSpec((tm, Dp), lambda i: (i, 0)),   # x row tile
                pl.BlockSpec((Dp, K1), lambda i: (0, 0)),   # W1 (resident)
                pl.BlockSpec((K1, K2), lambda i: (0, 0)),   # W2 (resident)
                pl.BlockSpec((1, K2), lambda i: (0, 0)),    # b2
            ],
            out_specs=pl.BlockSpec((tm, out_cols), lambda i: (i, 0)),
        ),
        compiler_params=pltpu.CompilerParams(
            dimension_semantics=("parallel",),
        ),
        cost_estimate=pl.CostEstimate(
            flops=flops, transcendentals=0, bytes_accessed=bytes_accessed),
    )(x, w1, w2, b2)
    return q


def _mlp_head(x, packed, *, tm=None, grid_steps=None):
    N = x.shape[0]
    q = _run_head(_mlp_head_kernel, x,
                  packed["w1"], packed["w2"], packed["b2"],
                  packed["out_cols"], tm=tm, grid_steps=grid_steps)
    return q[:N, :packed["num_actions"]]


def _dueling_head(x, packed, *, tm=None, grid_steps=None):
    N = x.shape[0]
    kernel = functools.partial(_dueling_head_kernel,
                               num_actions=packed["num_actions"],
                               adv_cols=packed["adv_cols"])
    q = _run_head(kernel, x,
                  packed["w1"], packed["w2"], packed["b2"],
                  packed["out_cols"], tm=tm, grid_steps=grid_steps)
    return q[:N, :packed["num_actions"]]


def dqn_head_forward(state_variables, task, packed, *, dueling,
                     final_fn=lambda x: x, variables=None):
    """Mirror of DQNHead.forward (packed = pack_params(raw_params, dueling))."""
    parts = list(state_variables) + [task]
    T, B = parts[0].shape[:2]
    D = packed["in_features"]
    Dp = packed["w1"].shape[0]
    dt = packed["w1"].dtype
    assert sum(p.shape[-1] for p in parts) == D

    # Single concatenate builds the kernel-ready x: features (cast to bf16),
    # the bias-ones column (column D, matched with the folded b1 row of W1),
    # and the zero pad up to Dp.  No separate pad/astype HBM passes.
    pieces = [p.astype(dt) for p in parts]
    pieces.append(jnp.ones((T, B, 1), dt))
    if Dp - D - 1 > 0:
        pieces.append(jnp.zeros((T, B, Dp - D - 1), dt))
    x = jnp.concatenate(pieces, axis=-1).reshape(T * B, Dp)

    if dueling:
        q = _dueling_head(x, packed)
    else:
        q = _mlp_head(x, packed)
    q = final_fn(q)
    if variables is not None:
        variables["q"] = q
        return None
    return [q]


# --------------------------------------------------------------------------
# Deterministic parameter init + pure-JAX reference
# --------------------------------------------------------------------------
def init_params(key, input_size, head_size, output_size, dueling):
    ks = jax.random.split(key, 8)
    s = 0.05
    if dueling:
        return {
            "wa1": s * jax.random.normal(ks[0], (input_size, head_size), jnp.float32),
            "ba1": s * jax.random.normal(ks[1], (1, head_size), jnp.float32),
            "wa2": s * jax.random.normal(ks[2], (head_size, output_size), jnp.float32),
            "adv_bias": jnp.zeros((1, 1), jnp.float32),  # torch.zeros(1) in rlpyt
            "wv1": s * jax.random.normal(ks[3], (input_size, head_size), jnp.float32),
            "bv1": s * jax.random.normal(ks[4], (1, head_size), jnp.float32),
            "wv2": s * jax.random.normal(ks[5], (head_size, 1), jnp.float32),
            "bv2": s * jax.random.normal(ks[6], (1, 1), jnp.float32),
        }
    else:
        return {
            "w1": s * jax.random.normal(ks[0], (input_size, head_size), jnp.float32),
            "b1": s * jax.random.normal(ks[1], (1, head_size), jnp.float32),
            "w2": s * jax.random.normal(ks[2], (head_size, output_size), jnp.float32),
            "b2": s * jax.random.normal(ks[3], (1, output_size), jnp.float32),
        }


def reference_forward(state_variables, task, params, dueling):
    state = jnp.concatenate(list(state_variables) + [task], axis=-1)
    T, B = state.shape[:2]
    x = state.reshape(T * B, -1)
    if dueling:
        ha = jax.nn.relu(x @ params["wa1"] + params["ba1"])
        adv = ha @ params["wa2"] + params["adv_bias"][0, 0]
        hv = jax.nn.relu(x @ params["wv1"] + params["bv1"])
        val = hv @ params["wv2"] + params["bv2"]
        return val + (adv - adv.mean(axis=-1, keepdims=True))
    else:
        h = jax.nn.relu(x @ params["w1"] + params["b1"])
        return h @ params["w2"] + params["b2"]


# --------------------------------------------------------------------------
if __name__ == "__main__":
    key = jax.random.PRNGKey(0)
    k_sv1, k_sv2, k_task, k_p1, k_p2 = jax.random.split(key, 5)

    sv1_dim, sv2_dim, task_dim = 24, 24, 16
    input_size = sv1_dim + sv2_dim + task_dim   # 64
    head_size = 128
    output_size = 8                             # number of actions

    ok = True
    # (T, B): single-step small case, single-step case with row padding
    # (N=300 -> tm=304, grid=1), and a multi-step case (N=1200 -> tm=600, grid=2).
    for (T, B) in ((2, 4), (3, 100), (4, 300)):
        state_variables = [
            jax.random.normal(k_sv1, (T, B, sv1_dim), jnp.float32),
            jax.random.normal(k_sv2, (T, B, sv2_dim), jnp.float32),
        ]
        task = jax.random.normal(k_task, (T, B, task_dim), jnp.float32)

        for dueling, kp in ((True, k_p1), (False, k_p2)):
            params = init_params(kp, input_size, head_size, output_size, dueling)
            packed = pack_params(params, dueling)                 # done once
            (q,) = dqn_head_forward(state_variables, task, packed, dueling=dueling)
            q = jax.block_until_ready(q)
            q_ref = reference_forward(state_variables, task, params, dueling)
            if q.shape != (T * B, output_size):
                ok = False
            # bf16 operands / f32 accumulation vs. pure-f32 reference.
            if not jnp.allclose(q, q_ref, atol=2e-2, rtol=2e-2):
                ok = False

    if ok:
        print("KERNEL_OK")
    else:
        print("KERNEL_MISMATCH")
</pallas_src>

<mosaic_0001>
module attributes {stable_mosaic.version = 11 : i64} {
  func.func @_dueling_head_kernel(%arg0: i32, %arg1: memref<8x128xbf16, #tpu.memory_space<vmem>>, %arg2: memref<128x256xbf16, #tpu.memory_space<vmem>>, %arg3: memref<256x256xbf16, #tpu.memory_space<vmem>>, %arg4: memref<1x256xf32, #tpu.memory_space<vmem>>, %arg5: memref<8x128xf32, #tpu.memory_space<vmem>>) attributes {dimension_semantics = [#tpu.dimension_semantics<parallel>], iteration_bounds = array<i64: 1>, scalar_prefetch = 0 : i64, scratch_operands = 0 : i64, tpu.core_type = #tpu.core_type<tc>, window_params = [{transform_indices = @transform_0, window_bounds = array<i64: 8, 128>}, {pipeline_mode = #tpu.pipeline_mode<synchronous>, transform_indices = @transform_1, window_bounds = array<i64: 128, 256>}, {pipeline_mode = #tpu.pipeline_mode<synchronous>, transform_indices = @transform_2, window_bounds = array<i64: 256, 256>}, {pipeline_mode = #tpu.pipeline_mode<synchronous>, transform_indices = @transform_3, window_bounds = array<i64: 1, 256>}, {transform_indices = @transform_4, window_bounds = array<i64: 8, 128>}]} {
    %c0 = arith.constant 0 : index
    %c0_0 = arith.constant 0 : index
    %0 = vector.load %arg1[%c0, %c0_0] : memref<8x128xbf16, #tpu.memory_space<vmem>>, vector<8x128xbf16>
    %c0_1 = arith.constant 0 : index
    %c0_2 = arith.constant 0 : index
    %1 = vector.load %arg2[%c0_1, %c0_2] : memref<128x256xbf16, #tpu.memory_space<vmem>>, vector<128x256xbf16>
    %cst = arith.constant dense<0.000000e+00> : vector<8x256xf32>
    %2 = tpu.matmul %0, %1, %cst {dimension_numbers = #tpu.dot_dimension_numbers<[1], [0], [0], [1], [0, 0, 1, 1], [], []>} : vector<8x128xbf16>, vector<128x256xbf16>, vector<8x256xf32> -> vector<8x256xf32>
    %cst_3 = arith.constant 0.000000e+00 : f32
    %3 = vector.broadcast %cst_3 : f32 to vector<8x256xf32>
    %4 = arith.maximumf %2, %3 : vector<8x256xf32>
    %5 = arith.truncf %4 : vector<8x256xf32> to vector<8x256xbf16>
    %c0_4 = arith.constant 0 : index
    %c0_5 = arith.constant 0 : index
    %6 = vector.load %arg3[%c0_4, %c0_5] : memref<256x256xbf16, #tpu.memory_space<vmem>>, vector<256x256xbf16>
    %cst_6 = arith.constant dense<0.000000e+00> : vector<8x256xf32>
    %7 = tpu.matmul %5, %6, %cst_6 {dimension_numbers = #tpu.dot_dimension_numbers<[1], [0], [0], [1], [0, 0, 1, 1], [], []>} : vector<8x256xbf16>, vector<256x256xbf16>, vector<8x256xf32> -> vector<8x256xf32>
    %c0_7 = arith.constant 0 : index
    %c0_8 = arith.constant 0 : index
    %8 = vector.load %arg4[%c0_7, %c0_8] : memref<1x256xf32, #tpu.memory_space<vmem>>, vector<1x256xf32>
    %9 = vector.broadcast %8 : vector<1x256xf32> to vector<8x256xf32>
    %10 = arith.addf %7, %9 : vector<8x256xf32>
    %11 = vector.extract_strided_slice %10 {offsets = [0, 0], sizes = [8, 128], strides = [1, 1]} : vector<8x256xf32> to vector<8x128xf32>
    %12 = vector.extract_strided_slice %10 {offsets = [0, 128], sizes = [8, 128], strides = [1, 1]} : vector<8x256xf32> to vector<8x128xf32>
    %cst_9 = arith.constant dense<0.000000e+00> : vector<8xf32>
    %13 = vector.multi_reduction <add>, %12, %cst_9 [1] : vector<8x128xf32> to vector<8xf32>
    %14 = vector.shape_cast %13 : vector<8xf32> to vector<8x1xf32>
    %cst_10 = arith.constant dense<0.000000e+00> : vector<8xf32>
    %15 = vector.multi_reduction <add>, %11, %cst_10 [1] : vector<8x128xf32> to vector<8xf32>
    %16 = vector.shape_cast %15 : vector<8xf32> to vector<8x1xf32>
    %cst_11 = arith.constant 1.250000e-01 : f32
    %17 = vector.broadcast %cst_11 : f32 to vector<8x1xf32>
    %18 = arith.mulf %16, %17 : vector<8x1xf32>
    %19 = vector.broadcast %14 : vector<8x1xf32> to vector<8x128xf32>
    %20 = arith.addf %19, %11 : vector<8x128xf32>
    %21 = vector.broadcast %18 : vector<8x1xf32> to vector<8x128xf32>
    %22 = arith.subf %20, %21 : vector<8x128xf32>
    %c0_12 = arith.constant 0 : index
    %c0_13 = arith.constant 0 : index
    %23 = vector.load %arg5[%c0_12, %c0_13] : memref<8x128xf32, #tpu.memory_space<vmem>>, vector<8x128xf32>
    tpu.vector_store %arg5[%c0_12, %c0_13], %22 {strides = array<i32>} : memref<8x128xf32, #tpu.memory_space<vmem>>, vector<8x128xf32>,
    return
  }
  func.func @transform_0(%arg0: i32) -> (i32, i32) {
    %c0_i32 = arith.constant 0 : i32
    %c0_i32_0 = arith.constant 0 : i32
    return %arg0, %c0_i32 : i32, i32
  }
  func.func @transform_1(%arg0: i32) -> (i32, i32) {
    %c0_i32 = arith.constant 0 : i32
    %c0_i32_0 = arith.constant 0 : i32
    %c0_i32_1 = arith.constant 0 : i32
    return %c0_i32, %c0_i32_0 : i32, i32
  }
  func.func @transform_2(%arg0: i32) -> (i32, i32) {
    %c0_i32 = arith.constant 0 : i32
    %c0_i32_0 = arith.constant 0 : i32
    %c0_i32_1 = arith.constant 0 : i32
    return %c0_i32, %c0_i32_0 : i32, i32
  }
  func.func @transform_3(%arg0: i32) -> (i32, i32) {
    %c0_i32 = arith.constant 0 : i32
    %c0_i32_0 = arith.constant 0 : i32
    %c0_i32_1 = arith.constant 0 : i32
    return %c0_i32, %c0_i32_0 : i32, i32
  }
  func.func @transform_4(%arg0: i32) -> (i32, i32) {
    %c0_i32 = arith.constant 0 : i32
    %c0_i32_0 = arith.constant 0 : i32
    return %arg0, %c0_i32 : i32, i32
  }
}

</mosaic_0001>

<bundles_post_ra>
// kernel: tpu_custom_call.1
= control target key start
LH: loop header
LB: loop body
LE: loop exit
PB: predicated region body
PF: predicated region fallthrough
CT: control target
= control target key end

     0   :  { %9 = vsyncpa [#allocation3], 0  ;;  %s779_s0 = inlined_call_operand.hbm [shape: bf16[8,128], index: 0, kind: input, shape index: {}]   ;;  %s780_s1 = inlined_call_operand.hbm [shape: bf16[128,256], index: 1, kind: input, shape index: {}]   ;;  %s781_s2 = inlined_call_operand.hbm [shape: bf16[256,256], index: 2, kind: input, shape index: {}]   ;;  %s782_s3 = inlined_call_operand.vmem [shape: f32[1,256], index: 3, kind: input, shape index: {}]   ;;  %s783_s4 = inlined_call_operand.hbm [shape: f32[8,128], index: 4, kind: output, shape index: {}]  }
   0x1   :  { %10 = vsyncpa [#allocation6], 0 }
   0x2   :  { %11 = vsyncpa [#allocation4], 0  ;;  %s690_s15 = smov [#allocation5]   ;;  %s596_s19 = scalar_lea.hbm %s780_s1, 2048 }
   0x3   :  { %s27_s16 = sshll.u32 %s690_s15, 4  ;;  %p597_p0 = scmp.ne.s32.totalorder %s780_s1, %s596_s19  ;;  %s28_s16 = int_to_ptr.vmem [resolvable:$true] %s27_s16 }
   0x4   :  { %p600_p1 = scmp.lt.u32.totalorder %s596_s19, %s780_s1 }
   0x6   :  { %p602_p2 = pnand %p600_p1, %p597_p0 }
   0x8   :  { %605 = shalt.err (!%p602_p2)
}
   0x9   :  { %s606_s24 = scalar_lea.vmem %s28_s16, 2048  ;;  %p611_p4 = scmp.lt.s32.totalorder %s28_s16, %s28_s16 }
   0xa   :  { %p607_p3 = scmp.ne.s32.totalorder %s28_s16, %s606_s24  ;;  %p612_p5 = scmp.lt.s32.totalorder %s606_s24, %s606_s24 }
   0xc   :  { %p613_p6 = por %p612_p5, %p611_p4 }
   0xe   :  { %p614_p7 = pnand %p613_p6, %p607_p3 }
  0x10   :  { %617 = shalt.err (!%p614_p7)
}
  0x11   :  { %s691_s25 = smov 128   ;;  %s692_s26 = smov 8  }
  0x12   :  { %33 = dma.hbm_to_vmem [thread:$0]  %s780_s1, 2048, %s28_s16, [#allocation6], %s691_s25, %s691_s25, %s692_s26  }
  0x13   :  { %s693_s29 = smov [#allocation2]   ;;  %s694_s5 = smov [#allocation7]  }
  0x14   :  { %s18_s30 = sshll.u32 %s693_s29, 4  ;;  %s39_s6 = sshll.u32 %s694_s5, 4  ;;  %s19_s30 = int_to_ptr.vmem [resolvable:$true] %s18_s30  ;;  %s40_s6 = int_to_ptr.vmem [resolvable:$true] %s39_s6 }
  0x15   :  { %s618_s9 = scalar_lea.hbm %s779_s0, 64 }
  0x16   :  { %p619_p8 = scmp.ne.s32.totalorder %s779_s0, %s618_s9  ;;  %p622_p9 = scmp.lt.u32.totalorder %s618_s9, %s779_s0 }
  0x18   :  { %p624_p10 = pnand %p622_p9, %p619_p8 }
  0x1a   :  { %627 = shalt.err (!%p624_p10)
}
  0x1b   :  { %s628_s1 = scalar_lea.vmem %s19_s30, 64  ;;  %p633_p12 = scmp.lt.s32.totalorder %s19_s30, %s19_s30 }
  0x1c   :  { %p629_p11 = scmp.ne.s32.totalorder %s19_s30, %s628_s1  ;;  %p634_p13 = scmp.lt.s32.totalorder %s628_s1, %s628_s1 }
  0x1e   :  { %p635_p0 = por %p634_p13, %p633_p12 }
  0x20   :  { %p636_p1 = pnand %p635_p0, %p629_p11 }
  0x22   :  { %639 = shalt.err (!%p636_p1)
}
  0x23   :  { %21 = dma.hbm_to_vmem [thread:$0]  %s779_s0, 64, %s19_s30, [#allocation3]  }
  0x24   :  { %s640_s18 = scalar_lea.hbm %s781_s2, 4096 }
  0x25   :  { %p641_p2 = scmp.ne.s32.totalorder %s781_s2, %s640_s18  ;;  %p644_p3 = scmp.lt.u32.totalorder %s640_s18, %s781_s2 }
  0x27   :  { %p646_p4 = pnand %p644_p3, %p641_p2 }
  0x29   :  { %649 = shalt.err (!%p646_p4)
}
  0x2a   :  { %s650_s23 = scalar_lea.vmem %s40_s6, 4096  ;;  %p655_p6 = scmp.lt.s32.totalorder %s40_s6, %s40_s6 }
  0x2b   :  { %p651_p5 = scmp.ne.s32.totalorder %s40_s6, %s650_s23  ;;  %p656_p7 = scmp.lt.s32.totalorder %s650_s23, %s650_s23 }
  0x2d   :  { %p657_p8 = por %p656_p7, %p655_p6 }
  0x2f   :  { %p658_p9 = pnand %p657_p8, %p651_p5 }
  0x31   :  { %661 = shalt.err (!%p658_p9)
}
  0x32   :  { %45 = dma.hbm_to_vmem [thread:$0]  %s781_s2, 4096, %s40_s6, [#allocation6], %s691_s25, %s691_s25, %s692_s26  }
  0x33   :  { %684 = dma.done.wait [#allocation3], 64  }
  0x34   :  { %685 = vsyncadd [#allocation3], 4294967232 }
  0x35   :  { %686 = dma.done.wait [#allocation6], 6144  }
  0x36   :  { %687 = vsyncadd [#allocation6], 4294961152  ;;  %v695_v0 = vmov 0   ;;  %v524_v1 = vld [vmem:[#allocation5 + $0x4] ss:$8 sps:$4 sm:$0xff]   ;;  %v234_v58 = vlaneseq  ;;  %s696_s26 = smov [#allocation8]  }
  0x37   :  { %187 = vmatprep.mubr.bf16.mxu0 %v695_v0  ;;  %v526_v2 = vld [vmem:[#allocation5] ss:$8 sps:$4 sm:$0xff]   ;;  %155 = vmatprep.subr.bf16.mxu0 %v524_v1  ;;  %v527_v3 = vld [vmem:[#allocation5 + $0x14] ss:$8 sps:$4 sm:$0xff]   ;;  %v529_v4 = vld [vmem:[#allocation5 + $0x10] ss:$8 sps:$4 sm:$0xff]  }
  0x38   :  { %156 = vmatpush1.bf16.msra.mxu0 %v526_v2  ;;  %v530_v5 = vld [vmem:[#allocation5 + $0x24] ss:$8 sps:$4 sm:$0xff]   ;;  %v532_v6 = vld [vmem:[#allocation5 + $0x20] ss:$8 sps:$4 sm:$0xff]   ;;  %v533_v7 = vld [vmem:[#allocation5 + $0x34] ss:$8 sps:$4 sm:$0xff]  }
  0x39   :  { %157 = vmatprep.subr.bf16.mxu0 %v527_v3  ;;  %v535_v8 = vld [vmem:[#allocation5 + $0x30] ss:$8 sps:$4 sm:$0xff]   ;;  %v536_v9 = vld [vmem:[#allocation5 + $0x44] ss:$8 sps:$4 sm:$0xff]   ;;  %v550_v11 = vld [vmem:[#allocation7] ss:$8 sps:$4 sm:$0xff]  }
  0x3a   :  { %v548_v10 = vld [vmem:[#allocation7 + $0x4] ss:$8 sps:$4 sm:$0xff]   ;;  %v551_v12 = vld [vmem:[#allocation7 + $0x14] ss:$8 sps:$4 sm:$0xff]   ;;  %v538_v13 = vld [vmem:[#allocation5 + $0x40] ss:$8 sps:$4 sm:$0xff]  }
  0x3b   :  { %404 = vmatprep.subr.bf16.mxu1 %v548_v10  ;;  %v553_v14 = vld [vmem:[#allocation7 + $0x10] ss:$8 sps:$4 sm:$0xff]   ;;  %v554_v15 = vld [vmem:[#allocation7 + $0x24] ss:$8 sps:$4 sm:$0xff]   ;;  %v539_v16 = vld [vmem:[#allocation5 + $0x54] ss:$8 sps:$4 sm:$0xff]  }
  0x3c   :  { %158 = vmatpush1.bf16.msra.mxu0 %v529_v4  ;;  %405 = vmatpush1.bf16.msra.mxu1 %v550_v11  ;;  %v541_v17 = vld [vmem:[#allocation5 + $0x50] ss:$8 sps:$4 sm:$0xff]   ;;  %v556_v18 = vld [vmem:[#allocation7 + $0x20] ss:$8 sps:$4 sm:$0xff]   ;;  %v557_v19 = vld [vmem:[#allocation7 + $0x34] ss:$8 sps:$4 sm:$0xff]  }
  0x3d   :  { %159 = vmatprep.subr.bf16.mxu0 %v530_v5  ;;  %406 = vmatprep.subr.bf16.mxu1 %v551_v12  ;;  %v542_v20 = vld [vmem:[#allocation5 + $0x64] ss:$8 sps:$4 sm:$0xff]   ;;  %v544_v21 = vld [vmem:[#allocation5 + $0x60] ss:$8 sps:$4 sm:$0xff]   ;;  %v559_v22 = vld [vmem:[#allocation7 + $0x30] ss:$8 sps:$4 sm:$0xff]  }
  0x3e   :  { %v560_v23 = vld [vmem:[#allocation7 + $0x44] ss:$8 sps:$4 sm:$0xff]   ;;  %v545_v24 = vld [vmem:[#allocation5 + $0x74] ss:$8 sps:$4 sm:$0xff]   ;;  %v547_v25 = vld [vmem:[#allocation5 + $0x70] ss:$8 sps:$4 sm:$0xff]  }
  0x3f   :  { %v562_v26 = vld [vmem:[#allocation7 + $0x40] ss:$8 sps:$4 sm:$0xff]   ;;  %v563_v27 = vld [vmem:[#allocation7 + $0x54] ss:$8 sps:$4 sm:$0xff]   ;;  %v565_v28 = vld [vmem:[#allocation7 + $0x50] ss:$8 sps:$4 sm:$0xff]  }
  0x40   :  { %160 = vmatpush1.bf16.msra.mxu0 %v532_v6  ;;  %407 = vmatpush1.bf16.msra.mxu1 %v553_v14  ;;  %v58_v29 = vld [vmem:[#allocation2] sm:$0xf]  ;;  %v566_v30 = vld [vmem:[#allocation7 + $0x64] ss:$8 sps:$4 sm:$0xff]   ;;  %v568_v31 = vld [vmem:[#allocation7 + $0x60] ss:$8 sps:$4 sm:$0xff]  }
  0x41   :  { %161 = vmatprep.subr.bf16.mxu0 %v533_v7  ;;  %408 = vmatprep.subr.bf16.mxu1 %v554_v15  ;;  %v569_v32 = vld [vmem:[#allocation7 + $0x74] ss:$8 sps:$4 sm:$0xff]   ;;  %v571_v33 = vld [vmem:[#allocation7 + $0x70] ss:$8 sps:$4 sm:$0xff]   ;;  %v572_v34 = vld [vmem:[#allocation7 + $0x84] ss:$8 sps:$4 sm:$0xff]  }
  0x42   :  { %v574_v35 = vld [vmem:[#allocation7 + $0x80] ss:$8 sps:$4 sm:$0xff]   ;;  %v575_v36 = vld [vmem:[#allocation7 + $0x94] ss:$8 sps:$4 sm:$0xff]   ;;  %v577_v37 = vld [vmem:[#allocation7 + $0x90] ss:$8 sps:$4 sm:$0xff]  }
  0x43   :  { %v578_v38 = vld [vmem:[#allocation7 + $0xa4] ss:$8 sps:$4 sm:$0xff]   ;;  %v580_v39 = vld [vmem:[#allocation7 + $0xa0] ss:$8 sps:$4 sm:$0xff]   ;;  %v581_v40 = vld [vmem:[#allocation7 + $0xb4] ss:$8 sps:$4 sm:$0xff]  }
  0x44   :  { %162 = vmatpush1.bf16.msra.mxu0 %v535_v8  ;;  %409 = vmatpush1.bf16.msra.mxu1 %v556_v18  ;;  %v583_v41 = vld [vmem:[#allocation7 + $0xb0] ss:$8 sps:$4 sm:$0xff]   ;;  %v584_v42 = vld [vmem:[#allocation7 + $0xc4] ss:$8 sps:$4 sm:$0xff]   ;;  %v586_v43 = vld [vmem:[#allocation7 + $0xc0] ss:$8 sps:$4 sm:$0xff]  }
  0x45   :  { %163 = vmatprep.subr.bf16.mxu0 %v536_v9  ;;  %410 = vmatprep.subr.bf16.mxu1 %v557_v19  ;;  %v587_v44 = vld [vmem:[#allocation7 + $0xd4] ss:$8 sps:$4 sm:$0xff]   ;;  %v589_v45 = vld [vmem:[#allocation7 + $0xd0] ss:$8 sps:$4 sm:$0xff]   ;;  %v590_v46 = vld [vmem:[#allocation7 + $0xe4] ss:$8 sps:$4 sm:$0xff]  }
  0x46   :  { %v592_v47 = vld [vmem:[#allocation7 + $0xe0] ss:$8 sps:$4 sm:$0xff]   ;;  %v593_v48 = vld [vmem:[#allocation7 + $0xf4] ss:$8 sps:$4 sm:$0xff]   ;;  %v595_v49 = vld [vmem:[#allocation7 + $0xf0] ss:$8 sps:$4 sm:$0xff]  }
  0x47   :  { %v235_v59 = vshrl.u32 %v234_v58, 7  ;;  %v232_v61 = vld [vmem:[%s782_s3] sm:$0x3]  ;;  %s459_s27 = sshll.u32 %s696_s26, 4  ;;  %s460_s27 = int_to_ptr.vmem [resolvable:$true] %s459_s27 }
  0x48   :  { %164 = vmatpush1.bf16.msra.mxu0 %v538_v13  ;;  %411 = vmatpush1.bf16.msra.mxu1 %v559_v22  ;;  %s662_s3 = scalar_lea.vmem %s460_s27, 128  ;;  %p667_p11 = scmp.lt.s32.totalorder %s460_s27, %s460_s27 }
  0x49   :  { %165 = vmatprep.subr.bf16.mxu0 %v539_v16  ;;  %412 = vmatprep.subr.bf16.mxu1 %v560_v23  ;;  %v240_v60 = vsub.s32 1, %v235_v59  ;;  %v236_v62 = vsub.s32 0, %v235_v59  ;;  %p663_p10 = scmp.ne.s32.totalorder %s460_s27, %s662_s3  ;;  %p668_p12 = scmp.lt.s32.totalorder %s662_s3, %s662_s3 }
  0x4b   :  { %v241_v63 = vrot.slane %v232_v61, %v240_v60  ;;  %v237_v2 = vrot.slane %v232_v61, %v236_v62  ;;  %p669_p13 = por %p668_p12, %p667_p11 }
  0x4c   :  { %166 = vmatpush1.bf16.msra.mxu0 %v541_v17  ;;  %413 = vmatpush1.bf16.msra.mxu1 %v562_v26 }
  0x4d   :  { %167 = vmatprep.subr.bf16.mxu0 %v542_v20  ;;  %414 = vmatprep.subr.bf16.mxu1 %v563_v27  ;;  %p670_p0 = pnand %p669_p13, %p663_p10 }
  0x50   :  { %168 = vmatpush1.bf16.msra.mxu0 %v544_v21  ;;  %415 = vmatpush1.bf16.msra.mxu1 %v565_v28 }
  0x51   :  { %169 = vmatprep.subr.bf16.mxu0 %v545_v24  ;;  %416 = vmatprep.subr.bf16.mxu1 %v566_v30 }
  0x54   :  { %170 = vmatpush1.bf16.msra.mxu0 %v547_v25  ;;  %417 = vmatpush1.bf16.msra.mxu1 %v568_v31 }
  0x55   :  { %418 = vmatprep.subr.bf16.mxu1 %v569_v32 }
  0x57   :  { %188 = vmatmul.mubr.bf16.vlgmr.msra.gmra.mrb[0].mxu0 %v58_v29 }
  0x58   :  { %419 = vmatpush1.bf16.msra.mxu1 %v571_v33 }
  0x59   :  { %420 = vmatprep.subr.bf16.mxu1 %v572_v34 }
  0x5c   :  { %421 = vmatpush1.bf16.msra.mxu1 %v574_v35 }
  0x5d   :  { %422 = vmatprep.subr.bf16.mxu1 %v575_v36 }
  0x60   :  { %423 = vmatpush1.bf16.msra.mxu1 %v577_v37 }
  0x61   :  { %424 = vmatprep.subr.bf16.mxu1 %v578_v38 }
  0x64   :  { %425 = vmatpush1.bf16.msra.mxu1 %v580_v39 }
  0x65   :  { %426 = vmatprep.subr.bf16.mxu1 %v581_v40 }
  0x68   :  { %427 = vmatpush1.bf16.msra.mxu1 %v583_v41 }
  0x69   :  { %428 = vmatprep.subr.bf16.mxu1 %v584_v42 }
  0x6c   :  { %429 = vmatpush1.bf16.msra.mxu1 %v586_v43 }
  0x6d   :  { %430 = vmatprep.subr.bf16.mxu1 %v587_v44 }
  0x70   :  { %431 = vmatpush1.bf16.msra.mxu1 %v589_v45 }
  0x71   :  { %432 = vmatprep.subr.bf16.mxu1 %v590_v46 }
  0x74   :  { %433 = vmatpush1.bf16.msra.mxu1 %v592_v47 }
  0x75   :  { %434 = vmatprep.subr.bf16.mxu1 %v593_v48 }
  0x78   :  { %435 = vmatpush1.bf16.msra.mxu1 %v595_v49 }
 0x12a   :  { %v189_v50 = vpop.f32.mrb[0].mxu0 }
 0x12b   :  { %v196_v51 = vmax.f32 %v189_v50, 0.0  ;;  %v191_v52 = vpop.f32.mrb[1].mxu0 }
 0x12c   :  { %v193_v53 = vpop.f32.mrb[2].mxu0  ;;  %v197_v54 = vmax.f32 %v191_v52, 0.0 }
 0x12d   :  { %v194_v55 = vpop.f32.mrb[3].mxu0  ;;  %v198_v57 = vpack.c.bf16 %v196_v51, %v196_v51 }
 0x12e   :  { %v199_v56 = vpack.c.bf16 %v197_v54, %v197_v54 }
 0x130   :  { %436 = vmatprep.mubr.bf16.mxu1 %v199_v56 }
 0x131   :  { %437 = vmatmul.mubr.bf16.vlgmr.msra.gmra.mrb[0].mxu1 %v198_v57 }
 0x204   :  { %v438_v0 = vpop.f32.mrb[0].mxu1 }
 0x205   :  { %v440_v1 = vpop.f32.mrb[1].mxu1  ;;  %v439_v6 = vadd.f32 %v438_v0, %v237_v2 }
 0x206   :  { %v442_v3 = vpop.f32.mrb[2].mxu1  ;;  %v441_v4 = vadd.f32 %v440_v1, %v241_v63 }
 0x207   :  { %v443_v5 = vpop.f32.mrb[3].mxu1 }
 0x208   :  { %445 = vadd.xlane.f32.xlu0 %v441_v4 }
 0x20c   :  { %447 = vadd.xlane.f32.xlu0 %v439_v6 }
 0x295   :  { %v446_v7 = vpop.xlane.xlu0 %445 }
 0x296   :  { %v450_v9 = vadd.f32 %v446_v7, %v439_v6 }
 0x299   :  { %v448_v8 = vpop.xlane.xlu0 %447 }
 0x29a   :  { %v449_v10 = vmul.f32 0.125, %v448_v8 }
 0x29c   :  { %v451_v11 = vsub.f32 %v450_v9, %v449_v10 }
 0x29e   :  { %452 = vst [vmem:[#allocation8] sm:$0xff] %v451_v11 }
 0x29f   :  { %673 = shalt.err (!%p670_p0)
}
 0x2a0   :  { %s674_s30 = scalar_lea.hbm %s783_s4, 128 }
 0x2a1   :  { %p675_p1 = scmp.ne.s32.totalorder %s783_s4, %s674_s30  ;;  %p678_p2 = scmp.lt.u32.totalorder %s674_s30, %s783_s4 }
 0x2a3   :  { %p680_p3 = pnand %p678_p2, %p675_p1 }
 0x2a5   :  { %683 = shalt.err (!%p680_p3)
}
 0x2a6   :  { %462 = dma.vmem_to_hbm [thread:$0]  %s460_s27, 128, %s783_s4, [#allocation4]  }
 0x2a7   :  { %688 = dma.done.wait [#allocation4], 128  }
 0x2a8   :  { %689 = vsyncadd [#allocation4], 4294967168 }
 0x2a9   :  { %466 = vsyncpa [#allocation3], 1 }
 0x2aa   :  { %467 = vsyncpa [#allocation6], 1 }
 0x2ab   :  { %468 = vsyncpa [#allocation4], 1 }

</bundles_post_ra>
